<compile_context>
chip_gen: v6e
topology: v6e:2x2x1
jax: 0.10.0
libtpu: 0.0.40
codegen_flags: <defaults>
</compile_context>

<pallas_src>
import functools

import jax
import jax.numpy as jnp
from jax.experimental import pallas as pl
from jax.experimental.pallas import tpu as pltpu


OUT_PAD = 128  # lane-padded width of the merged (objectness | bbox-delta) output
FC_PAD = 128   # lane-padded width of the fc1/fc2 hidden dimension


# ----------------------------------------------------------------------------
# Fused Pallas kernel:
#   relu(x @ W11) -> relu(. @ W1) -> relu(. @ W2) -> relu(. @ Wfc1) -> relu(. @ Wfc2)
#   -> out = . @ Wcat   (raw logits; sigmoid on lane 0 is applied in the wrapper)
# All conv layers pre-folded into dense matmuls; one lane-dense bf16 output store per tile.
# ----------------------------------------------------------------------------
def box_head_fused_kernel(x_ref, w11_ref, b11_ref, w1_ref, b1_ref, w2_ref, b2_ref,
                          wfc1_ref, bfc1_ref, wfc2_ref, bfc2_ref, wcat_ref, bcat_ref,
                          out_ref):
    def mm(h, w_ref, b_ref):
        # bf16 operands on the MXU, f32 accumulation; bias add in f32.
        return jnp.dot(h, w_ref[...], preferred_element_type=jnp.float32) + b_ref[...]

    def relu_bf16(z):
        # ReLU in f32 (v5e VPU has no bf16 path), then narrow for the next MXU matmul.
        return jnp.maximum(z, 0.0).astype(jnp.bfloat16)

    h = x_ref[...]                              # bf16 [tm, Cin*R*R]
    h = relu_bf16(mm(h, w11_ref, b11_ref))      # folded 1x1 conv + ReLU
    h = relu_bf16(mm(h, w1_ref, b1_ref))        # folded 3x3 conv + ReLU
    h = relu_bf16(mm(h, w2_ref, b2_ref))        # folded 3x3 conv + ReLU
    h = relu_bf16(mm(h, wfc1_ref, bfc1_ref))    # fc1 + ReLU (lane-padded to 128)
    h = relu_bf16(mm(h, wfc2_ref, bfc2_ref))    # fc2 + ReLU (lane-padded to 128)
    out_ref[...] = mm(h, wcat_ref, bcat_ref).astype(out_ref.dtype)   # [tm, OUT_PAD] raw logits


# ----------------------------------------------------------------------------
# Pallas wrapper: row padding / tiling heuristics, weight residency, bf16 I/O.
# ----------------------------------------------------------------------------
def _weight_spec(shape, single_buffer):
    if single_buffer:
        # resident weights (constant index_map) don't need a revolving double buffer
        return pl.BlockSpec(shape, lambda i: (0, 0), pipeline_mode=pl.Buffered(1))
    return pl.BlockSpec(shape, lambda i: (0, 0))


def _probe_buffered_weight_support():
    """Run a tiny kernel once to verify pipeline_mode=pl.Buffered(1) lowers on this JAX/TPU."""
    try:
        def k(w_ref, x_ref, o_ref):
            o_ref[...] = x_ref[...] + w_ref[...]

        f = pl.pallas_call(
            k,
            out_shape=jax.ShapeDtypeStruct((32, 128), jnp.float32),
            grid=(2,),
            in_specs=[pl.BlockSpec((16, 128), lambda i: (0, 0),
                                   pipeline_mode=pl.Buffered(1)),
                      pl.BlockSpec((16, 128), lambda i: (i, 0))],
            out_specs=pl.BlockSpec((16, 128), lambda i: (i, 0)),
        )
        jax.block_until_ready(f(jnp.ones((16, 128), jnp.float32),
                                jnp.zeros((32, 128), jnp.float32)))
        return True
    except Exception:
        return False


def box_head_fused_pallas(roi2d, fused, use_buffered_weights=False):
    N, K_in = roi2d.shape

    if N <= 256:
        # Latency-bound regime: one grid step, no megacore split (duplicated weight DMA +
        # per-step overhead would cost more than it saves).
        n_pad = max(16, ((N + 15) // 16) * 16)       # multiple of 16 -> full bf16 (16,128) vregs
        tm = n_pad
        semantics = ("arbitrary",)
    else:
        # Large batch: tile rows at 128 and shard across TensorCores (>=128 rows per core).
        n_pad = ((N + 127) // 128) * 128
        tm = 128
        semantics = ("parallel",)

    if n_pad != N:
        roi2d = jnp.pad(roi2d, ((0, n_pad - N), (0, 0)))
    x = roi2d.astype(jnp.bfloat16)                   # halve input DMA; MXU wants bf16 anyway
    grid = (n_pad // tm,)

    keys = ("w11", "b11", "w1", "b1", "w2", "b2",
            "wfc1", "bfc1", "wfc2", "bfc2", "wcat", "bcat")
    weight_args = [fused[k] for k in keys]
    # constant index_map -> weights fetched once, resident in VMEM across grid steps
    w_specs = [_weight_spec(a.shape, use_buffered_weights) for a in weight_args]

    out = pl.pallas_call(
        box_head_fused_kernel,
        out_shape=jax.ShapeDtypeStruct((n_pad, OUT_PAD), jnp.bfloat16),
        grid=grid,
        in_specs=[pl.BlockSpec((tm, K_in), lambda i: (i, 0))] + w_specs,
        out_specs=pl.BlockSpec((tm, OUT_PAD), lambda i: (i, 0)),
        compiler_params=pltpu.CompilerParams(dimension_semantics=semantics),
    )(x, *weight_args)
    return out[:N]


# ----------------------------------------------------------------------------
# Host-side weight folding: conv layers -> dense block-banded matmul weights,
# FC head zero-padded to lane width 128, obj/reg heads merged into one [128, 128] matmul.
# ----------------------------------------------------------------------------
def _shift_matrix(R, dy, dx):
    """S[p_in, p_out] = 1 iff input pixel p_in is the (dy,dx) in-bounds neighbor of p_out."""
    yy, xx = jnp.meshgrid(jnp.arange(R), jnp.arange(R), indexing="ij")
    y_in, x_in = yy + dy, xx + dx
    valid = (y_in >= 0) & (y_in < R) & (x_in >= 0) & (x_in < R)
    tgt = jnp.where(valid, y_in * R + x_in, -1).reshape(-1)  # per output pixel
    return (jnp.arange(R * R)[:, None] == tgt[None, :]).astype(jnp.float32)


def fold_params(params, R, mm_dtype=jnp.bfloat16):
    Cin, Cc = params["w11"].shape
    RR = R * R

    # 1x1 conv == block-diagonal channel matmul on the (pixel-major, channel-minor) slab.
    w11_big = jnp.kron(jnp.eye(RR, dtype=jnp.float32), params["w11"])   # [RR*Cin, RR*Cc]
    b11_big = jnp.tile(params["b11"], (1, RR))                          # [1, RR*Cc]

    def fold3x3(w9):  # w9: [9, Cc, Cc] (HWIO-flattened taps)
        # NOTE: O((RR*Cc)^2) dense block-banded matrix — fine at R=4, Cc=16 (128 KiB bf16).
        big = jnp.zeros((RR * Cc, RR * Cc), jnp.float32)
        for dy in (-1, 0, 1):
            for dx in (-1, 0, 1):
                k = (dy + 1) * 3 + (dx + 1)
                big = big + jnp.kron(_shift_matrix(R, dy, dx), w9[k])
        return big

    w1_big = fold3x3(params["w1"])
    w2_big = fold3x3(params["w2"])
    b1_big = jnp.tile(params["b1"], (1, RR))
    b2_big = jnp.tile(params["b2"], (1, RR))

    # FC head lane-padded to 128 (zero pad is exact through ReLU + zero-padded next layers).
    Fin, Fc = params["wfc1"].shape
    wfc1 = jnp.zeros((Fin, FC_PAD), jnp.float32).at[:, :Fc].set(params["wfc1"])
    bfc1 = jnp.zeros((1, FC_PAD), jnp.float32).at[:, :Fc].set(params["bfc1"])
    wfc2 = jnp.zeros((FC_PAD, FC_PAD), jnp.float32).at[:Fc, :Fc].set(params["wfc2"])
    bfc2 = jnp.zeros((1, FC_PAD), jnp.float32).at[:, :Fc].set(params["bfc2"])

    # merged, lane-padded head: column 0 = objectness logit, columns 1..4 = bbox deltas.
    wcat = jnp.zeros((FC_PAD, OUT_PAD), jnp.float32)
    wcat = wcat.at[:Fc, 0:1].set(params["wobj"]).at[:Fc, 1:5].set(params["wreg"])
    bcat = jnp.zeros((1, OUT_PAD), jnp.float32)
    bcat = bcat.at[:, 0:1].set(params["bobj"]).at[:, 1:5].set(params["breg"])

    c = lambda w: w.astype(mm_dtype)
    return dict(
        w11=c(w11_big), b11=b11_big,
        w1=c(w1_big), b1=b1_big,
        w2=c(w2_big), b2=b2_big,
        wfc1=c(wfc1), bfc1=bfc1,
        wfc2=c(wfc2), bfc2=bfc2,
        wcat=c(wcat), bcat=bcat,
    )


# ----------------------------------------------------------------------------
# JAX glue: torchvision-style RoIAlign (aligned=True), gather-free (separable matmuls).
# ----------------------------------------------------------------------------
def _axis_interp_matrix(lo, hi, R, sr, size):
    """[A, R*sr, size] bilinear interpolation matrix along one spatial axis."""
    bin_sz = (hi - lo) / R
    pidx = jnp.arange(R, dtype=jnp.float32)
    sidx = jnp.arange(sr, dtype=jnp.float32)
    coords = (lo[:, None, None] + pidx[None, :, None] * bin_sz[:, None, None]
              + (sidx[None, None, :] + 0.5) * bin_sz[:, None, None] / sr)   # [A, R, sr]
    valid = (coords > -1.0) & (coords < size)
    c = jnp.clip(coords, 0.0, size - 1)
    i0 = jnp.clip(jnp.floor(c).astype(jnp.int32), 0, size - 1)
    i1 = jnp.minimum(i0 + 1, size - 1)
    frac = c - i0.astype(jnp.float32)
    grid = jnp.arange(size, dtype=jnp.int32)
    m = ((grid[None, None, None, :] == i0[..., None]).astype(jnp.float32) * (1.0 - frac)[..., None]
         + (grid[None, None, None, :] == i1[..., None]).astype(jnp.float32) * frac[..., None])
    m = jnp.where(valid[..., None], m, 0.0)
    A = lo.shape[0]
    return m.reshape(A, R * sr, size)


def roi_align_image(feat_chw, boxes_xyxy, R, spatial_scale, sr, aligned=True):
    C, H, W = feat_chw.shape
    feat_hwc = jnp.transpose(feat_chw, (1, 2, 0))  # [H, W, C]
    offset = 0.5 if aligned else 0.0
    x1 = boxes_xyxy[:, 0] * spatial_scale - offset
    y1 = boxes_xyxy[:, 1] * spatial_scale - offset
    x2 = boxes_xyxy[:, 2] * spatial_scale - offset
    y2 = boxes_xyxy[:, 3] * spatial_scale - offset
    if not aligned:
        x2 = x1 + jnp.maximum(x2 - x1, 1.0)
        y2 = y1 + jnp.maximum(y2 - y1, 1.0)
    My = _axis_interp_matrix(y1, y2, R, sr, H)        # [A, R*sr, H]
    Mx = _axis_interp_matrix(x1, x2, R, sr, W)        # [A, R*sr, W]
    t = jnp.einsum("aph,hwc->apwc", My, feat_hwc)     # [A, R*sr, W, C]
    s = jnp.einsum("aqw,apwc->apqc", Mx, t)           # [A, R*sr(y), R*sr(x), C]
    A = boxes_xyxy.shape[0]
    s = s.reshape(A, R, sr, R, sr, C)
    return s.mean(axis=(2, 4))                        # [A, R, R, C]


# ----------------------------------------------------------------------------
# BoxHead forward (eval head path): returns (objectnesses [B,A,1], bbox_deltas [B,A,4]).
# ----------------------------------------------------------------------------
def box_head_forward(feature_map, proposals, fused_params, roi_resolution,
                     use_buffered_weights=False):
    B, Cin, H, W = feature_map.shape
    A = proposals.shape[1]
    R = roi_resolution

    # (x, y, w, h) -> (x1, y1, x2, y2)
    x, y, w, h = jnp.split(proposals, 4, axis=2)
    mapping = jnp.concatenate([x, y, x + w, y + h], axis=2)          # [B, A, 4]

    roi = jax.vmap(lambda f, b: roi_align_image(f, b, R, 1.0 / 32.0, 2))(
        feature_map, mapping)                                        # [B, A, R, R, Cin]
    roi2d = roi.reshape(B * A, R * R * Cin)                          # pixel-major, channel-minor

    out = box_head_fused_pallas(roi2d, fused_params, use_buffered_weights)   # [B*A, OUT_PAD] bf16
    # sigmoid applied in the wrapper on the single objectness lane only (16 elems, not [tm,128]).
    objectnesses = jax.nn.sigmoid(out[:, 0:1].astype(jnp.float32)).reshape(B, A, 1)
    bbox_deltas = out[:, 1:5].astype(jnp.float32).reshape(B, A, 4)
    return objectnesses, bbox_deltas


def init_params(key, Cin, Cc, R, Fc):
    ks = jax.random.split(key, 7)
    s = 0.05
    return dict(
        w11=jax.random.normal(ks[0], (Cin, Cc), jnp.float32) * s,
        b11=jnp.zeros((1, Cc), jnp.float32),
        w1=jax.random.normal(ks[1], (9, Cc, Cc), jnp.float32) * s,   # 3x3 HWIO flattened
        b1=jnp.full((1, Cc), 0.01, jnp.float32),
        w2=jax.random.normal(ks[2], (9, Cc, Cc), jnp.float32) * s,
        b2=jnp.full((1, Cc), 0.01, jnp.float32),
        wfc1=jax.random.normal(ks[3], (Cc * R * R, Fc), jnp.float32) * s,
        bfc1=jnp.zeros((1, Fc), jnp.float32),
        wfc2=jax.random.normal(ks[4], (Fc, Fc), jnp.float32) * s,
        bfc2=jnp.zeros((1, Fc), jnp.float32),
        wobj=jax.random.normal(ks[5], (Fc, 1), jnp.float32) * s,
        bobj=jnp.zeros((1, 1), jnp.float32),
        wreg=jax.random.normal(ks[6], (Fc, 4), jnp.float32) * s,
        breg=jnp.zeros((1, 4), jnp.float32),
    )


if __name__ == "__main__":
    # Config (conf_box): conv_channel=16, fc_channel=32, roi_resolution=4; rpn_channel=8.
    B, A = 2, 8
    Cin, H, W = 8, 16, 16          # stride-32 feature map of a 512x512 input image
    Cc, Fc, R = 16, 32, 4

    use_buffered = _probe_buffered_weight_support()   # single-buffer resident weights if supported

    key = jax.random.PRNGKey(0)
    kf, kp, kw = jax.random.split(key, 3)

    feature_map = jax.random.normal(kf, (B, Cin, H, W), jnp.float32)   # NCHW, like PyTorch

    kx, ky, kwd, kh = jax.random.split(kp, 4)
    px = jax.random.uniform(kx, (B, A, 1), minval=0.0, maxval=380.0)
    py = jax.random.uniform(ky, (B, A, 1), minval=0.0, maxval=380.0)
    pw = jax.random.uniform(kwd, (B, A, 1), minval=16.0, maxval=128.0)
    ph = jax.random.uniform(kh, (B, A, 1), minval=16.0, maxval=128.0)
    proposals = jnp.concatenate([px, py, pw, ph], axis=2)              # [B, A, 4] (x,y,w,h)

    params = init_params(kw, Cin, Cc, R, Fc)
    fused_params = fold_params(params, R)   # conv layers folded into dense MXU matmuls

    fwd = jax.jit(functools.partial(box_head_forward, roi_resolution=R,
                                    use_buffered_weights=use_buffered))
    objectnesses, bbox_deltas = fwd(feature_map, proposals, fused_params)
    jax.block_until_ready((objectnesses, bbox_deltas))

    assert objectnesses.shape == (B, A, 1)
    assert bbox_deltas.shape == (B, A, 4)
    assert bool(jnp.all((objectnesses >= 0.0) & (objectnesses <= 1.0)))
    assert bool(jnp.all(jnp.isfinite(bbox_deltas)))
    print("KERNEL_OK")
</pallas_src>

<mosaic_0001>
module attributes {stable_mosaic.version = 11 : i64} {
  func.func @k(%arg0: i32, %arg1: memref<16x128xf32, #tpu.memory_space<vmem>>, %arg2: memref<16x128xf32, #tpu.memory_space<vmem>>, %arg3: memref<16x128xf32, #tpu.memory_space<vmem>>) attributes {dimension_semantics = [#tpu.dimension_semantics<arbitrary>], iteration_bounds = array<i64: 2>, scalar_prefetch = 0 : i64, scratch_operands = 0 : i64, tpu.core_type = #tpu.core_type<tc>, window_params = [{pipeline_mode = #tpu.pipeline_mode<synchronous>, transform_indices = @transform_0, window_bounds = array<i64: 16, 128>}, {transform_indices = @transform_1, window_bounds = array<i64: 16, 128>}, {transform_indices = @transform_2, window_bounds = array<i64: 16, 128>}]} {
    %c0 = arith.constant 0 : index
    %c0_0 = arith.constant 0 : index
    %0 = vector.load %arg2[%c0, %c0_0] : memref<16x128xf32, #tpu.memory_space<vmem>>, vector<16x128xf32>
    %c0_1 = arith.constant 0 : index
    %c0_2 = arith.constant 0 : index
    %1 = vector.load %arg1[%c0_1, %c0_2] : memref<16x128xf32, #tpu.memory_space<vmem>>, vector<16x128xf32>
    %2 = arith.addf %0, %1 : vector<16x128xf32>
    %c0_3 = arith.constant 0 : index
    %c0_4 = arith.constant 0 : index
    %3 = vector.load %arg3[%c0_3, %c0_4] : memref<16x128xf32, #tpu.memory_space<vmem>>, vector<16x128xf32>
    tpu.vector_store %arg3[%c0_3, %c0_4], %2 {strides = array<i32>} : memref<16x128xf32, #tpu.memory_space<vmem>>, vector<16x128xf32>,
    return
  }
  func.func @transform_0(%arg0: i32) -> (i32, i32) {
    %c0_i32 = arith.constant 0 : i32
    %c0_i32_0 = arith.constant 0 : i32
    %c0_i32_1 = arith.constant 0 : i32
    return %c0_i32, %c0_i32_0 : i32, i32
  }
  func.func @transform_1(%arg0: i32) -> (i32, i32) {
    %c0_i32 = arith.constant 0 : i32
    %c0_i32_0 = arith.constant 0 : i32
    return %arg0, %c0_i32 : i32, i32
  }
  func.func @transform_2(%arg0: i32) -> (i32, i32) {
    %c0_i32 = arith.constant 0 : i32
    %c0_i32_0 = arith.constant 0 : i32
    return %arg0, %c0_i32 : i32, i32
  }
}

module attributes {stable_mosaic.version = 11 : i64} {
  func.func @box_head_fused_kernel(%arg0: i32, %arg1: memref<16x128xbf16, #tpu.memory_space<vmem>>, %arg2: memref<128x256xbf16, #tpu.memory_space<vmem>>, %arg3: memref<1x256xf32, #tpu.memory_space<vmem>>, %arg4: memref<256x256xbf16, #tpu.memory_space<vmem>>, %arg5: memref<1x256xf32, #tpu.memory_space<vmem>>, %arg6: memref<256x256xbf16, #tpu.memory_space<vmem>>, %arg7: memref<1x256xf32, #tpu.memory_space<vmem>>, %arg8: memref<256x128xbf16, #tpu.memory_space<vmem>>, %arg9: memref<1x128xf32, #tpu.memory_space<vmem>>, %arg10: memref<128x128xbf16, #tpu.memory_space<vmem>>, %arg11: memref<1x128xf32, #tpu.memory_space<vmem>>, %arg12: memref<128x128xbf16, #tpu.memory_space<vmem>>, %arg13: memref<1x128xf32, #tpu.memory_space<vmem>>, %arg14: memref<16x128xbf16, #tpu.memory_space<vmem>>) attributes {dimension_semantics = [#tpu.dimension_semantics<arbitrary>], iteration_bounds = array<i64: 1>, scalar_prefetch = 0 : i64, scratch_operands = 0 : i64, tpu.core_type = #tpu.core_type<tc>, window_params = [{transform_indices = @transform_0, window_bounds = array<i64: 16, 128>}, {pipeline_mode = #tpu.pipeline_mode<synchronous>, transform_indices = @transform_1, window_bounds = array<i64: 128, 256>}, {pipeline_mode = #tpu.pipeline_mode<synchronous>, transform_indices = @transform_2, window_bounds = array<i64: 1, 256>}, {pipeline_mode = #tpu.pipeline_mode<synchronous>, transform_indices = @transform_3, window_bounds = array<i64: 256, 256>}, {pipeline_mode = #tpu.pipeline_mode<synchronous>, transform_indices = @transform_4, window_bounds = array<i64: 1, 256>}, {pipeline_mode = #tpu.pipeline_mode<synchronous>, transform_indices = @transform_5, window_bounds = array<i64: 256, 256>}, {pipeline_mode = #tpu.pipeline_mode<synchronous>, transform_indices = @transform_6, window_bounds = array<i64: 1, 256>}, {pipeline_mode = #tpu.pipeline_mode<synchronous>, transform_indices = @transform_7, window_bounds = array<i64: 256, 128>}, {pipeline_mode = #tpu.pipeline_mode<synchronous>, transform_indices = @transform_8, window_bounds = array<i64: 1, 128>}, {pipeline_mode = #tpu.pipeline_mode<synchronous>, transform_indices = @transform_9, window_bounds = array<i64: 128, 128>}, {pipeline_mode = #tpu.pipeline_mode<synchronous>, transform_indices = @transform_10, window_bounds = array<i64: 1, 128>}, {pipeline_mode = #tpu.pipeline_mode<synchronous>, transform_indices = @transform_11, window_bounds = array<i64: 128, 128>}, {pipeline_mode = #tpu.pipeline_mode<synchronous>, transform_indices = @transform_12, window_bounds = array<i64: 1, 128>}, {transform_indices = @transform_13, window_bounds = array<i64: 16, 128>}]} {
    %c0 = arith.constant 0 : index
    %c0_0 = arith.constant 0 : index
    %0 = vector.load %arg1[%c0, %c0_0] : memref<16x128xbf16, #tpu.memory_space<vmem>>, vector<16x128xbf16>
    %c0_1 = arith.constant 0 : index
    %c0_2 = arith.constant 0 : index
    %1 = vector.load %arg2[%c0_1, %c0_2] : memref<128x256xbf16, #tpu.memory_space<vmem>>, vector<128x256xbf16>
    %cst = arith.constant dense<0.000000e+00> : vector<16x256xf32>
    %2 = tpu.matmul %0, %1, %cst {dimension_numbers = #tpu.dot_dimension_numbers<[1], [0], [0], [1], [0, 0, 1, 1], [], []>} : vector<16x128xbf16>, vector<128x256xbf16>, vector<16x256xf32> -> vector<16x256xf32>
    %c0_3 = arith.constant 0 : index
    %c0_4 = arith.constant 0 : index
    %3 = vector.load %arg3[%c0_3, %c0_4] : memref<1x256xf32, #tpu.memory_space<vmem>>, vector<1x256xf32>
    %4 = vector.broadcast %3 : vector<1x256xf32> to vector<16x256xf32>
    %5 = arith.addf %2, %4 : vector<16x256xf32>
    %cst_5 = arith.constant 0.000000e+00 : f32
    %6 = vector.broadcast %cst_5 : f32 to vector<16x256xf32>
    %7 = arith.maximumf %5, %6 : vector<16x256xf32>
    %8 = arith.truncf %7 : vector<16x256xf32> to vector<16x256xbf16>
    %c0_6 = arith.constant 0 : index
    %c0_7 = arith.constant 0 : index
    %9 = vector.load %arg4[%c0_6, %c0_7] : memref<256x256xbf16, #tpu.memory_space<vmem>>, vector<256x256xbf16>
    %cst_8 = arith.constant dense<0.000000e+00> : vector<16x256xf32>
    %10 = tpu.matmul %8, %9, %cst_8 {dimension_numbers = #tpu.dot_dimension_numbers<[1], [0], [0], [1], [0, 0, 1, 1], [], []>} : vector<16x256xbf16>, vector<256x256xbf16>, vector<16x256xf32> -> vector<16x256xf32>
    %c0_9 = arith.constant 0 : index
    %c0_10 = arith.constant 0 : index
    %11 = vector.load %arg5[%c0_9, %c0_10] : memref<1x256xf32, #tpu.memory_space<vmem>>, vector<1x256xf32>
    %12 = vector.broadcast %11 : vector<1x256xf32> to vector<16x256xf32>
    %13 = arith.addf %10, %12 : vector<16x256xf32>
    %cst_11 = arith.constant 0.000000e+00 : f32
    %14 = vector.broadcast %cst_11 : f32 to vector<16x256xf32>
    %15 = arith.maximumf %13, %14 : vector<16x256xf32>
    %16 = arith.truncf %15 : vector<16x256xf32> to vector<16x256xbf16>
    %c0_12 = arith.constant 0 : index
    %c0_13 = arith.constant 0 : index
    %17 = vector.load %arg6[%c0_12, %c0_13] : memref<256x256xbf16, #tpu.memory_space<vmem>>, vector<256x256xbf16>
    %cst_14 = arith.constant dense<0.000000e+00> : vector<16x256xf32>
    %18 = tpu.matmul %16, %17, %cst_14 {dimension_numbers = #tpu.dot_dimension_numbers<[1], [0], [0], [1], [0, 0, 1, 1], [], []>} : vector<16x256xbf16>, vector<256x256xbf16>, vector<16x256xf32> -> vector<16x256xf32>
    %c0_15 = arith.constant 0 : index
    %c0_16 = arith.constant 0 : index
    %19 = vector.load %arg7[%c0_15, %c0_16] : memref<1x256xf32, #tpu.memory_space<vmem>>, vector<1x256xf32>
    %20 = vector.broadcast %19 : vector<1x256xf32> to vector<16x256xf32>
    %21 = arith.addf %18, %20 : vector<16x256xf32>
    %cst_17 = arith.constant 0.000000e+00 : f32
    %22 = vector.broadcast %cst_17 : f32 to vector<16x256xf32>
    %23 = arith.maximumf %21, %22 : vector<16x256xf32>
    %24 = arith.truncf %23 : vector<16x256xf32> to vector<16x256xbf16>
    %c0_18 = arith.constant 0 : index
    %c0_19 = arith.constant 0 : index
    %25 = vector.load %arg8[%c0_18, %c0_19] : memref<256x128xbf16, #tpu.memory_space<vmem>>, vector<256x128xbf16>
    %cst_20 = arith.constant dense<0.000000e+00> : vector<16x128xf32>
    %26 = tpu.matmul %24, %25, %cst_20 {dimension_numbers = #tpu.dot_dimension_numbers<[1], [0], [0], [1], [0, 0, 1, 1], [], []>} : vector<16x256xbf16>, vector<256x128xbf16>, vector<16x128xf32> -> vector<16x128xf32>
    %c0_21 = arith.constant 0 : index
    %c0_22 = arith.constant 0 : index
    %27 = vector.load %arg9[%c0_21, %c0_22] : memref<1x128xf32, #tpu.memory_space<vmem>>, vector<1x128xf32>
    %28 = vector.broadcast %27 : vector<1x128xf32> to vector<16x128xf32>
    %29 = arith.addf %26, %28 : vector<16x128xf32>
    %cst_23 = arith.constant 0.000000e+00 : f32
    %30 = vector.broadcast %cst_23 : f32 to vector<16x128xf32>
    %31 = arith.maximumf %29, %30 : vector<16x128xf32>
    %32 = arith.truncf %31 : vector<16x128xf32> to vector<16x128xbf16>
    %c0_24 = arith.constant 0 : index
    %c0_25 = arith.constant 0 : index
    %33 = vector.load %arg10[%c0_24, %c0_25] : memref<128x128xbf16, #tpu.memory_space<vmem>>, vector<128x128xbf16>
    %cst_26 = arith.constant dense<0.000000e+00> : vector<16x128xf32>
    %34 = tpu.matmul %32, %33, %cst_26 {dimension_numbers = #tpu.dot_dimension_numbers<[1], [0], [0], [1], [0, 0, 1, 1], [], []>} : vector<16x128xbf16>, vector<128x128xbf16>, vector<16x128xf32> -> vector<16x128xf32>
    %c0_27 = arith.constant 0 : index
    %c0_28 = arith.constant 0 : index
    %35 = vector.load %arg11[%c0_27, %c0_28] : memref<1x128xf32, #tpu.memory_space<vmem>>, vector<1x128xf32>
    %36 = vector.broadcast %35 : vector<1x128xf32> to vector<16x128xf32>
    %37 = arith.addf %34, %36 : vector<16x128xf32>
    %cst_29 = arith.constant 0.000000e+00 : f32
    %38 = vector.broadcast %cst_29 : f32 to vector<16x128xf32>
    %39 = arith.maximumf %37, %38 : vector<16x128xf32>
    %40 = arith.truncf %39 : vector<16x128xf32> to vector<16x128xbf16>
    %c0_30 = arith.constant 0 : index
    %c0_31 = arith.constant 0 : index
    %41 = vector.load %arg12[%c0_30, %c0_31] : memref<128x128xbf16, #tpu.memory_space<vmem>>, vector<128x128xbf16>
    %cst_32 = arith.constant dense<0.000000e+00> : vector<16x128xf32>
    %42 = tpu.matmul %40, %41, %cst_32 {dimension_numbers = #tpu.dot_dimension_numbers<[1], [0], [0], [1], [0, 0, 1, 1], [], []>} : vector<16x128xbf16>, vector<128x128xbf16>, vector<16x128xf32> -> vector<16x128xf32>
    %c0_33 = arith.constant 0 : index
    %c0_34 = arith.constant 0 : index
    %43 = vector.load %arg13[%c0_33, %c0_34] : memref<1x128xf32, #tpu.memory_space<vmem>>, vector<1x128xf32>
    %44 = vector.broadcast %43 : vector<1x128xf32> to vector<16x128xf32>
    %45 = arith.addf %42, %44 : vector<16x128xf32>
    %46 = arith.truncf %45 : vector<16x128xf32> to vector<16x128xbf16>
    %c0_35 = arith.constant 0 : index
    %c0_36 = arith.constant 0 : index
    %47 = vector.load %arg14[%c0_35, %c0_36] : memref<16x128xbf16, #tpu.memory_space<vmem>>, vector<16x128xbf16>
    tpu.vector_store %arg14[%c0_35, %c0_36], %46 {strides = array<i32>} : memref<16x128xbf16, #tpu.memory_space<vmem>>, vector<16x128xbf16>,
    return
  }
  func.func @transform_0(%arg0: i32) -> (i32, i32) {
    %c0_i32 = arith.constant 0 : i32
    %c0_i32_0 = arith.constant 0 : i32
    return %arg0, %c0_i32 : i32, i32
  }
  func.func @transform_1(%arg0: i32) -> (i32, i32) {
    %c0_i32 = arith.constant 0 : i32
    %c0_i32_0 = arith.constant 0 : i32
    %c0_i32_1 = arith.constant 0 : i32
    return %c0_i32, %c0_i32_0 : i32, i32
  }
  func.func @transform_2(%arg0: i32) -> (i32, i32) {
    %c0_i32 = arith.constant 0 : i32
    %c0_i32_0 = arith.constant 0 : i32
    %c0_i32_1 = arith.constant 0 : i32
    return %c0_i32, %c0_i32_0 : i32, i32
  }
  func.func @transform_3(%arg0: i32) -> (i32, i32) {
    %c0_i32 = arith.constant 0 : i32
    %c0_i32_0 = arith.constant 0 : i32
    %c0_i32_1 = arith.constant 0 : i32
    return %c0_i32, %c0_i32_0 : i32, i32
  }
  func.func @transform_4(%arg0: i32) -> (i32, i32) {
    %c0_i32 = arith.constant 0 : i32
    %c0_i32_0 = arith.constant 0 : i32
    %c0_i32_1 = arith.constant 0 : i32
    return %c0_i32, %c0_i32_0 : i32, i32
  }
  func.func @transform_5(%arg0: i32) -> (i32, i32) {
    %c0_i32 = arith.constant 0 : i32
    %c0_i32_0 = arith.constant 0 : i32
    %c0_i32_1 = arith.constant 0 : i32
    return %c0_i32, %c0_i32_0 : i32, i32
  }
  func.func @transform_6(%arg0: i32) -> (i32, i32) {
    %c0_i32 = arith.constant 0 : i32
    %c0_i32_0 = arith.constant 0 : i32
    %c0_i32_1 = arith.constant 0 : i32
    return %c0_i32, %c0_i32_0 : i32, i32
  }
  func.func @transform_7(%arg0: i32) -> (i32, i32) {
    %c0_i32 = arith.constant 0 : i32
    %c0_i32_0 = arith.constant 0 : i32
    %c0_i32_1 = arith.constant 0 : i32
    return %c0_i32, %c0_i32_0 : i32, i32
  }
  func.func @transform_8(%arg0: i32) -> (i32, i32) {
    %c0_i32 = arith.constant 0 : i32
    %c0_i32_0 = arith.constant 0 : i32
    %c0_i32_1 = arith.constant 0 : i32
    return %c0_i32, %c0_i32_0 : i32, i32
  }
  func.func @transform_9(%arg0: i32) -> (i32, i32) {
    %c0_i32 = arith.constant 0 : i32
    %c0_i32_0 = arith.constant 0 : i32
    %c0_i32_1 = arith.constant 0 : i32
    return %c0_i32, %c0_i32_0 : i32, i32
  }
  func.func @transform_10(%arg0: i32) -> (i32, i32) {
    %c0_i32 = arith.constant 0 : i32
    %c0_i32_0 = arith.constant 0 : i32
    %c0_i32_1 = arith.constant 0 : i32
    return %c0_i32, %c0_i32_0 : i32, i32
  }
  func.func @transform_11(%arg0: i32) -> (i32, i32) {
    %c0_i32 = arith.constant 0 : i32
    %c0_i32_0 = arith.constant 0 : i32
    %c0_i32_1 = arith.constant 0 : i32
    return %c0_i32, %c0_i32_0 : i32, i32
  }
  func.func @transform_12(%arg0: i32) -> (i32, i32) {
    %c0_i32 = arith.constant 0 : i32
    %c0_i32_0 = arith.constant 0 : i32
    %c0_i32_1 = arith.constant 0 : i32
    return %c0_i32, %c0_i32_0 : i32, i32
  }
  func.func @transform_13(%arg0: i32) -> (i32, i32) {
    %c0_i32 = arith.constant 0 : i32
    %c0_i32_0 = arith.constant 0 : i32
    return %arg0, %c0_i32 : i32, i32
  }
}

</mosaic_0001>

<bundles_post_ra>
// kernel: tpu_custom_call.1
= control target key start
LH: loop header
LB: loop body
LE: loop exit
PB: predicated region body
PF: predicated region fallthrough
CT: control target
= control target key end

     0   :  { %7 = vsyncpa [#allocation3], 0  ;;  %s694_s0 = inlined_call_operand.hbm [shape: f32[16,128], index: 0, kind: input, shape index: {}]   ;;  %s695_s1 = inlined_call_operand.hbm [shape: f32[32,128], index: 1, kind: input, shape index: {}]   ;;  %s696_s2 = inlined_call_operand.hbm [shape: f32[32,128], index: 2, kind: output, shape index: {}]  }
   0x1   :  { %8 = vsyncpa [#allocation6], 0 }
   0x2   :  { %10 = vsyncpa [#allocation6 + $0x1], 0 }
   0x3   :  { %11 = vsyncpa [#allocation4], 0 }
   0x4   :  { %13 = vsyncpa [#allocation4 + $0x1], 0  ;;  %s511_s9 = smov 0   ;;  %s513_s10 = smov 0  }
   0x5   :  { %s515_s11 = smov 0   ;;  %s517_s12 = smov 0  }
   0x6 LB: > { %s532_s13 = sadd.s32 4294967295, %s487_s12   ;;  %s286_s14 = sadd.s32 4294967294, %s487_s12   ;;  %s487_s12 = sphi %s517_s12, %s718_s12   ;;  %s483_s11 = sphi %s515_s11, %s717_s11   ;;  %s479_s10 = sphi %s513_s10, %s716_s10   ;;  %s475_s9 = sphi %s511_s9, %s715_s9  }
   0x7   : > { %p60_p0 = scmp.ne.s32.totalorder %s479_s10, %s475_s9  ;;  %p697_p1 = scmp.eq.s32.totalorder %s532_s13, 0 }
   0x8   : > { %p90_p3 = scmp.eq.s32.totalorder %s286_s14, 1  ;;  %p287_p5 = scmp.ge.s32.totalorder %s487_s12, 1 }
   0x9   : > { %p541_p4 = por %p697_p1, %p60_p0  ;;  %p97_p7 = scmp.lt.s32.totalorder %s487_s12, 3 }
   0xa   : > { %p546_p6 = por %p90_p3, %p60_p0  ;;  %s489_s18 = smov [#allocation2]  }
   0xb   : > { %s701_s15 = scalar_select %p541_p4, 1, 0 }
   0xc   : > { %s702_s16 = scalar_select %p546_p6, 1, 0 }
   0xd   : > { %p551_p8 = pnand %p287_p5, %p97_p7  ;;  %s109_s19 = sshll.u32 %s489_s18, 4  ;;  %s110_s19 = int_to_ptr.vmem [resolvable:$true] %s109_s19 }
   0xe   : > { %s565_s21 = sadd.s32 1, %s487_s12   ;;  %s47_s22 = sadd.s32 1, %s483_s11 }
   0xf   : > { %s703_s17 = scalar_select %p551_p8, 1, 0 }
  0x10   : > { %p312_p9 = pneg %p551_p8  ;;  %s44_s23 = ssub.s32 %s487_s12, %s565_s21 }
  0x11   : > { %s376_s24 = scalar_lea.vmem %s110_s19, 256  ;;  %p384_p5 = scmp.lt.s32.totalorder %s110_s19, %s110_s19 }
  0x12   : > { %p560_p11 = pnand %p312_p9, %p697_p1  ;;  %p377_p13 = scmp.ne.s32.totalorder %s110_s19, %s376_s24 }
  0x13   : > { %p385_p7 = scmp.lt.s32.totalorder %s376_s24, %s376_s24 }
  0x14   : > { %p367_p12 = pneg %p560_p11 }
  0x15   : > { %p386_p10 = por %p385_p7, %p384_p5 }
  0x16   : > { %p379_p0 = pnand %p377_p13, %p367_p12 }
  0x18   : > { %p380_p3 = pneg %p379_p0 }
  0x1a   : > { %p387_p2 = pnand %p386_p10, %p380_p3 }
  0x1c   : > { %390 = shalt.err (!%p387_p2)
}
  0x1d   : > { %s490_s25 = smov 128   ;;  %s491_s26 = smov 8  }
  0x1e   : > { %315 = dma.hbm_to_vmem [thread:$0]  (!%p560_p11), %s694_s0, 256, %s110_s19, [#allocation3], %s490_s25, %s490_s25, %s491_s26  }
  0x1f   : > { %p45_p2 = scmp.eq.s32.totalorder %s44_s23, 0  ;;  %p54_p9 = scmp.ne.s32.totalorder %s483_s11, %s479_s10 }
  0x20   : > { %p55_p10 = scmp.eq.s32.totalorder %s487_s12, 0  ;;  %p325_p12 = scmp.lt.s32.totalorder %s487_s12, 2 }
  0x21   : > { %s585_s29 = scalar_select %p45_p2, %s483_s11, %s47_s22  }
  0x22   : > { %p56_p13 = por %p55_p10, %p54_p9  ;;  %p705_p0 = scmp.eq.s32.totalorder %s532_s13, 1 }
  0x23   : > { %s123_s3 = sand.u32 1, %s483_s11   ;;  %s302_s4 = sshll.u32 %s487_s12, 8 }
  0x24   : > { %p589_p3 = por %p705_p0, %p54_p9  ;;  %s290_s5 = sshll.u32 %s123_s3, 4 }
  0x25   : > { %s598_s8 = scalar_lea.hbm %s695_s1, %s302_s4  ;;  %s127_s14 = scalar_lea.vmem [#allocation5], %s290_s5 }
  0x26   : > { %s706_s30 = scalar_select %p589_p3, 1, 0 }
  0x27   : > { %s134_s18 = sshll.u32 %s127_s14, 4  ;;  %p600_p11 = pnand %p325_p12, %p56_p13  ;;  %s604_s18 = int_to_ptr.vmem [resolvable:$true] %s134_s18 }
  0x28   : > { %s606_s20 = scalar_lea.sflag [#allocation6], %s123_s3  ;;  %s391_s22 = scalar_lea.hbm %s598_s8, 256 }
  0x29   : > { %p392_p5 = scmp.ne.s32.totalorder %s598_s8, %s391_s22  ;;  %p393_p7 = pneg %p600_p11 }
  0x2a   : > { %s396_s27 = scalar_lea.hbm %s695_s1, 512  ;;  %p397_p10 = scmp.lt.s32.totalorder %s598_s8, %s695_s1 }
  0x2b   : > { %p394_p2 = pnand %p393_p7, %p392_p5  ;;  %p398_p12 = scmp.lt.s32.totalorder %s396_s27, %s391_s22 }
  0x2d   : > { %p395_p9 = pneg %p394_p2  ;;  %p399_p13 = por %p398_p12, %p397_p10 }
  0x2f   : > { %p400_p0 = pnand %p399_p13, %p395_p9 }
  0x31   : > { %403 = shalt.err (!%p400_p0)
}
  0x32   : > { %s404_s3 = scalar_lea.vmem %s604_s18, 256  ;;  %s492_s5 = smov [#allocation5]  }
  0x33   : > { %p405_p1 = scmp.ne.s32.totalorder %s604_s18, %s404_s3  ;;  %s409_s6 = sshll.u32 %s492_s5, 4  ;;  %s410_s6 = int_to_ptr.vmem [resolvable:$false] %s409_s6 }
  0x34   : > { %s411_s7 = scalar_lea.vmem %s410_s6, 512  ;;  %p412_p2 = scmp.lt.s32.totalorder %s604_s18, %s410_s6 }
  0x35   : > { %p407_p6 = pnand %p405_p1, %p393_p7  ;;  %p413_p3 = scmp.lt.s32.totalorder %s411_s7, %s404_s3 }
  0x37   : > { %p408_p5 = pneg %p407_p6  ;;  %p414_p4 = por %p413_p3, %p412_p2 }
  0x39   : > { %p415_p8 = pnand %p414_p4, %p408_p5 }
  0x3b   : > { %418 = shalt.err (!%p415_p8)
}
  0x3c   : > { %319 = dma.hbm_to_vmem [thread:$0]  (!%p600_p11), %s598_s8, 256, %s604_s18, %s606_s20, %s490_s25, %s490_s25, %s491_s26  }
  0x3d   : > { %p708_p1 = scmp.ne.s32.totalorder %s703_s17, 0 }
  0x3e   : > { %p709_p6 = scmp.eq.s32.totalorder (!%p708_p1), %s532_s13, 0 }
  0x3f   : > { %146 = sbr.rel (%p708_p1) target bundleno = 99 (0x63), region = 28 }
  0x44   : > { %462 = dma.done.wait (%p709_p6), [#allocation3], 256   ;;  %p710_p7 = pmov %p709_p6 }
  0x45   : > { %s637_s14 = sand.u32 1, %s479_s10   ;;  %p711_p4 = scmp.ne.s32.totalorder %s701_s15, 0 }
  0x46   : > { %464 = vsyncadd (%p710_p7), [#allocation3], 4294967040  ;;  %s295_s19 = sshll.u32 %s637_s14, 4  ;;  %s153_s22 = scalar_lea.sflag [#allocation6], %s637_s14 }
  0x47   : > { %s156_s23 = scalar_lea.vmem [#allocation5], %s295_s19 }
  0x48   : > { %466 = dma.done.wait (%p711_p4), %s153_s22, 256  }
  0x49   : > { %468 = vsyncadd (%p711_p4), %s153_s22, 4294967040  ;;  %s176_s17 = scalar_lea.vmem [#allocation7], %s295_s19  ;;  %s303_s26 = sshll.u32 %s532_s13, 8  ;;  %v179_v0 = vld [vmem:[%s156_s23] sm:$0xff]  ;;  %v180_v2 = vld [vmem:[%s156_s23 + $0x8] sm:$0xff] }
  0x4a   : > { %s201_s25 = sshll.u32 %s176_s17, 4  ;;  %v181_v1 = vld [vmem:[#allocation2] sm:$0xff]  ;;  %v182_v4 = vld [vmem:[#allocation2 + $0x8] sm:$0xff]  ;;  %s651_s15 = scalar_lea.hbm %s696_s2, %s303_s26  ;;  %s646_s25 = int_to_ptr.vmem [resolvable:$true] %s201_s25 }
  0x4b   : > { %v183_v3 = vadd.f32 %v181_v1, %v179_v0  ;;  %v184_v5 = vadd.f32 %v182_v4, %v180_v2  ;;  %s188_s20 = scalar_lea.sflag [#allocation4], %s637_s14  ;;  %s419_s13 = scalar_lea.vmem %s646_s25, 256 }
  0x4c   : > { %p420_p8 = scmp.ne.s32.totalorder %s646_s25, %s419_s13  ;;  %p712_p3 = scmp.ne.s32.totalorder %s706_s30, 0 }
  0x4d   : > { %185 = vst [vmem:[%s176_s17] sm:$0xff] %v183_v3  ;;  %186 = vst [vmem:[%s176_s17 + $0x8] sm:$0xff] %v184_v5  ;;  %s493_s24 = smov [#allocation7]  }
  0x4e   : > { %p421_p11 = pnand %p420_p8, %p712_p3  ;;  %s423_s27 = sshll.u32 %s493_s24, 4  ;;  %s424_s27 = int_to_ptr.vmem [resolvable:$false] %s423_s27 }
  0x4f   : > { %s425_s28 = scalar_lea.vmem %s424_s27, 512  ;;  %p426_p10 = scmp.lt.s32.totalorder %s646_s25, %s424_s27 }
  0x50   : > { %p422_p9 = pneg %p421_p11  ;;  %p427_p12 = scmp.lt.s32.totalorder %s425_s28, %s419_s13 }
  0x52   : > { %p428_p13 = por %p427_p12, %p426_p10 }
  0x54   : > { %p429_p0 = pnand %p428_p13, %p422_p9 }
  0x56   : > { %432 = shalt.err (!%p429_p0)
}
  0x57   : > { %s433_s4 = scalar_lea.hbm %s651_s15, 256  ;;  %s437_s6 = scalar_lea.hbm %s696_s2, 512 }
  0x58   : > { %p434_p5 = scmp.ne.s32.totalorder %s651_s15, %s433_s4  ;;  %p438_p6 = scmp.lt.s32.totalorder %s651_s15, %s696_s2 }
  0x59   : > { %p439_p7 = scmp.lt.s32.totalorder %s437_s6, %s433_s4 }
  0x5a   : > { %p435_p2 = pnand %p434_p5, %p712_p3 }
  0x5b   : > { %p440_p4 = por %p439_p7, %p438_p6 }
  0x5c   : > { %p436_p1 = pneg %p435_p2 }
  0x5e   : > { %p441_p8 = pnand %p440_p4, %p436_p1 }
  0x60   : > { %444 = shalt.err (!%p441_p8)
}
  0x61   : > { %s494_s22 = smov 128   ;;  %s495_s23 = smov 8  }
  0x62   : > { %310 = dma.vmem_to_hbm [thread:$0]  (%p712_p3), %s646_s25, 256, %s651_s15, %s188_s20, %s494_s22, %s494_s22, %s495_s23  }
  0x63 PF: > { %s216_s17 = sand.u32 1, %s475_s9   ;;  %p713_p11 = scmp.ne.s32.totalorder %s702_s16, 0 }
  0x64   : > { %p714_p9 = scmp.ge.s32.totalorder %s487_s12, 2  ;;  %s217_s26 = scalar_lea.sflag [#allocation4], %s216_s17 }
  0x66   : > { %p321_p10 = pnand %p714_p9, %p713_p11 }
  0x68   : > { %p322_p12 = pneg %p321_p10 }
  0x6a   : > { %470 = dma.done.wait (%p322_p12), %s217_s26, 256  }
  0x6b   : > { %472 = vsyncadd (%p322_p12), %s217_s26, 4294967040  ;;  %p16_p13 = scmp.ge.s32.totalorder %s565_s21, 4   ;;  %s715_s9 = smov %s479_s10 }
  0x6c   : > { %s716_s10 = smov %s483_s11  ;;  %s717_s11 = smov %s585_s29 }
  0x6d   : > { %s718_s12 = smov %s565_s21  ;;  %18 = sbr.rel (!%p16_p13) target bundleno = 6 (0x6), region = 78 }
  0x72   :  { %222 = vsyncpa [#allocation3], 1 }
  0x73   :  { %224 = vsyncpa [#allocation3 + $0x1], 1 }
  0x74   :  { %225 = vsyncpa [#allocation6], 1 }
  0x75   :  { %227 = vsyncpa [#allocation6 + $0x1], 1 }
  0x76   :  { %228 = vsyncpa [#allocation4], 1 }
  0x77   :  { %230 = vsyncpa [#allocation4 + $0x1], 1 }

// kernel: box_head_forward.1
= control target key start
LH: loop header
LB: loop body
LE: loop exit
PB: predicated region body
PF: predicated region fallthrough
CT: control target
= control target key end

     0   :  { %v1497_v1 = vmov 0   ;;  %vm1499_vm0 = vmmov 0   ;;  %s1958_s1 = inlined_call_operand.vmem [shape: bf16[128,256], index: 1, kind: input, shape index: {}]   ;;  %s1959_s0 = inlined_call_operand.vmem [shape: bf16[16,128], index: 0, kind: input, shape index: {}]   ;;  %s1960_s3 = inlined_call_operand.vmem [shape: bf16[256,256], index: 3, kind: input, shape index: {}]   ;;  %s1961_s5 = inlined_call_operand.vmem [shape: bf16[256,256], index: 5, kind: input, shape index: {}]   ;;  %s1962_s2 = inlined_call_operand.vmem [shape: f32[1,256], index: 2, kind: input, shape index: {}]   ;;  %s1963_s7 = inlined_call_operand.vmem [shape: bf16[256,128], index: 7, kind: input, shape index: {}]   ;;  %s1964_s4 = inlined_call_operand.vmem [shape: f32[1,256], index: 4, kind: input, shape index: {}]   ;;  %s1965_s9 = inlined_call_operand.vmem [shape: bf16[128,128], index: 9, kind: input, shape index: {}]   ;;  %s1966_s6 = inlined_call_operand.vmem [shape: f32[1,256], index: 6, kind: input, shape index: {}]   ;;  %s1967_s11 = inlined_call_operand.vmem [shape: bf16[128,128], index: 11, kind: input, shape index: {}]   ;;  %s1968_s8 = inlined_call_operand.vmem [shape: f32[1,128], index: 8, kind: input, shape index: {}]   ;;  %s1969_s10 = inlined_call_operand.vmem [shape: f32[1,128], index: 10, kind: input, shape index: {}]   ;;  %s1970_s12 = inlined_call_operand.vmem [shape: f32[1,128], index: 12, kind: input, shape index: {}]   ;;  %s1971_s13 = inlined_call_operand.vmem [shape: bf16[16,128], index: 13, kind: output, shape index: {}]  }
   0x1   :  { %v1344_v0 = vld [vmem:[%s1958_s1 + $0x74] ss:$8 sps:$4 sm:$0xff]   ;;  %193 = vmatprep.mubr.bf16.mxu0 %v1497_v1  ;;  %v1346_v2 = vld [vmem:[%s1958_s1 + $0x70] ss:$8 sps:$4 sm:$0xff]   ;;  %v1347_v3 = vld [vmem:[%s1958_s1 + $0x64] ss:$8 sps:$4 sm:$0xff]  }
   0x2   :  { %161 = vmatprep.subr.bf16.mxu0 %v1344_v0  ;;  %v1349_v4 = vld [vmem:[%s1958_s1 + $0x60] ss:$8 sps:$4 sm:$0xff]   ;;  %v1350_v5 = vld [vmem:[%s1958_s1 + $0x54] ss:$8 sps:$4 sm:$0xff]   ;;  %v1352_v6 = vld [vmem:[%s1958_s1 + $0x50] ss:$8 sps:$4 sm:$0xff]  }
   0x3   :  { %162 = vmatpush1.bf16.msra.mxu0 %v1346_v2  ;;  %v1353_v7 = vld [vmem:[%s1958_s1 + $0x44] ss:$8 sps:$4 sm:$0xff]   ;;  %v1355_v8 = vld [vmem:[%s1958_s1 + $0x40] ss:$8 sps:$4 sm:$0xff]   ;;  %v1356_v9 = vld [vmem:[%s1958_s1 + $0x34] ss:$8 sps:$4 sm:$0xff]  }
   0x4   :  { %163 = vmatprep.subr.bf16.mxu0 %v1347_v3  ;;  %v1369_v10 = vld [vmem:[%s1960_s3 + $0x74] ss:$8 sps:$4 sm:$0xff]   ;;  %v1371_v11 = vld [vmem:[%s1960_s3 + $0x70] ss:$8 sps:$4 sm:$0xff]   ;;  %v1372_v12 = vld [vmem:[%s1960_s3 + $0x64] ss:$8 sps:$4 sm:$0xff]  }
   0x5   :  { %414 = vmatprep.subr.bf16.mxu1 %v1369_v10  ;;  %v1358_v13 = vld [vmem:[%s1958_s1 + $0x30] ss:$8 sps:$4 sm:$0xff]   ;;  %v1374_v14 = vld [vmem:[%s1960_s3 + $0x60] ss:$8 sps:$4 sm:$0xff]   ;;  %v1359_v15 = vld [vmem:[%s1958_s1 + $0x24] ss:$8 sps:$4 sm:$0xff]  }
   0x6   :  { %415 = vmatpush1.bf16.msra.mxu1 %v1371_v11  ;;  %v1375_v16 = vld [vmem:[%s1960_s3 + $0x54] ss:$8 sps:$4 sm:$0xff]   ;;  %v1361_v17 = vld [vmem:[%s1958_s1 + $0x20] ss:$8 sps:$4 sm:$0xff]   ;;  %v1377_v18 = vld [vmem:[%s1960_s3 + $0x50] ss:$8 sps:$4 sm:$0xff]  }
   0x7   :  { %164 = vmatpush1.bf16.msra.mxu0 %v1349_v4  ;;  %416 = vmatprep.subr.bf16.mxu1 %v1372_v12  ;;  %v1362_v19 = vld [vmem:[%s1958_s1 + $0x14] ss:$8 sps:$4 sm:$0xff]   ;;  %v1378_v20 = vld [vmem:[%s1960_s3 + $0x44] ss:$8 sps:$4 sm:$0xff]   ;;  %v1364_v21 = vld [vmem:[%s1958_s1 + $0x10] ss:$8 sps:$4 sm:$0xff]   ;;  %v65_v12 = vlaneseq }
   0x8   :  { %165 = vmatprep.subr.bf16.mxu0 %v1350_v5  ;;  %v1380_v22 = vld [vmem:[%s1960_s3 + $0x40] ss:$8 sps:$4 sm:$0xff]   ;;  %v1365_v23 = vld [vmem:[%s1958_s1 + $0x4] ss:$8 sps:$4 sm:$0xff]   ;;  %v1381_v24 = vld [vmem:[%s1960_s3 + $0x34] ss:$8 sps:$4 sm:$0xff]  }
   0x9   :  { %v1367_v25 = vld [vmem:[%s1958_s1] ss:$8 sps:$4 sm:$0xff]   ;;  %v1383_v26 = vld [vmem:[%s1960_s3 + $0x30] ss:$8 sps:$4 sm:$0xff]   ;;  %v1384_v27 = vld [vmem:[%s1960_s3 + $0x24] ss:$8 sps:$4 sm:$0xff]  }
   0xa   :  { %417 = vmatpush1.bf16.msra.mxu1 %v1374_v14  ;;  %v1368_v28 = vld [vmem:[%s1959_s0] sm:$0xff]   ;;  %v1387_v30 = vld [vmem:[%s1960_s3 + $0x14] ss:$8 sps:$4 sm:$0xff]   ;;  %v1389_v31 = vld [vmem:[%s1960_s3 + $0x10] ss:$8 sps:$4 sm:$0xff]  }
   0xb   :  { %166 = vmatpush1.bf16.msra.mxu0 %v1352_v6  ;;  %418 = vmatprep.subr.bf16.mxu1 %v1375_v16  ;;  %v1386_v29 = vld [vmem:[%s1960_s3 + $0x20] ss:$8 sps:$4 sm:$0xff]   ;;  %v1390_v32 = vld [vmem:[%s1960_s3 + $0x4] ss:$8 sps:$4 sm:$0xff]   ;;  %v1393_v34 = vld [vmem:[%s1960_s3 + $0xf4] ss:$8 sps:$4 sm:$0xff]  }
   0xc   :  { %167 = vmatprep.subr.bf16.mxu0 %v1353_v7  ;;  %v1392_v33 = vld [vmem:[%s1960_s3] ss:$8 sps:$4 sm:$0xff]   ;;  %v1395_v35 = vld [vmem:[%s1960_s3 + $0xf0] ss:$8 sps:$4 sm:$0xff]   ;;  %v1396_v36 = vld [vmem:[%s1960_s3 + $0xe4] ss:$8 sps:$4 sm:$0xff]  }
   0xd   :  { %v1398_v37 = vld [vmem:[%s1960_s3 + $0xe0] ss:$8 sps:$4 sm:$0xff]   ;;  %v1399_v38 = vld [vmem:[%s1960_s3 + $0xd4] ss:$8 sps:$4 sm:$0xff]   ;;  %v1401_v39 = vld [vmem:[%s1960_s3 + $0xd0] ss:$8 sps:$4 sm:$0xff]  }
   0xe   :  { %419 = vmatpush1.bf16.msra.mxu1 %v1377_v18  ;;  %v1402_v40 = vld [vmem:[%s1960_s3 + $0xc4] ss:$8 sps:$4 sm:$0xff]   ;;  %v1404_v41 = vld [vmem:[%s1960_s3 + $0xc0] ss:$8 sps:$4 sm:$0xff]   ;;  %v1405_v42 = vld [vmem:[%s1960_s3 + $0xb4] ss:$8 sps:$4 sm:$0xff]  }
   0xf   :  { %168 = vmatpush1.bf16.msra.mxu0 %v1355_v8  ;;  %420 = vmatprep.subr.bf16.mxu1 %v1378_v20  ;;  %v1407_v43 = vld [vmem:[%s1960_s3 + $0xb0] ss:$8 sps:$4 sm:$0xff]   ;;  %v1408_v44 = vld [vmem:[%s1960_s3 + $0xa4] ss:$8 sps:$4 sm:$0xff]   ;;  %v1410_v45 = vld [vmem:[%s1960_s3 + $0xa0] ss:$8 sps:$4 sm:$0xff]  }
  0x10   :  { %169 = vmatprep.subr.bf16.mxu0 %v1356_v9  ;;  %v1411_v46 = vld [vmem:[%s1960_s3 + $0x94] ss:$8 sps:$4 sm:$0xff]   ;;  %v1413_v47 = vld [vmem:[%s1960_s3 + $0x90] ss:$8 sps:$4 sm:$0xff]   ;;  %v1414_v48 = vld [vmem:[%s1960_s3 + $0x84] ss:$8 sps:$4 sm:$0xff]  }
  0x11   :  { %v1416_v49 = vld [vmem:[%s1960_s3 + $0x80] ss:$8 sps:$4 sm:$0xff]   ;;  %v1417_v50 = vld [vmem:[%s1961_s5 + $0x70] ss:$8 sps:$4 sm:$0xff]   ;;  %v1419_v51 = vld [vmem:[%s1961_s5 + $0x74] ss:$8 sps:$4 sm:$0xff]  }
  0x12   :  { %421 = vmatpush1.bf16.msra.mxu1 %v1380_v22  ;;  %v1422_v52 = vld [vmem:[%s1961_s5 + $0x64] ss:$8 sps:$4 sm:$0xff]   ;;  %v1420_v53 = vld [vmem:[%s1961_s5 + $0x60] ss:$8 sps:$4 sm:$0xff]   ;;  %v1425_v54 = vld [vmem:[%s1961_s5 + $0x54] ss:$8 sps:$4 sm:$0xff]  }
  0x13   :  { %170 = vmatpush1.bf16.msra.mxu0 %v1358_v13  ;;  %422 = vmatprep.subr.bf16.mxu1 %v1381_v24  ;;  %v1423_v55 = vld [vmem:[%s1961_s5 + $0x50] ss:$8 sps:$4 sm:$0xff]   ;;  %v1428_v56 = vld [vmem:[%s1961_s5 + $0x44] ss:$8 sps:$4 sm:$0xff]   ;;  %v1426_v57 = vld [vmem:[%s1961_s5 + $0x40] ss:$8 sps:$4 sm:$0xff]  }
  0x14   :  { %171 = vmatprep.subr.bf16.mxu0 %v1359_v15  ;;  %v1431_v58 = vld [vmem:[%s1961_s5 + $0x34] ss:$8 sps:$4 sm:$0xff]   ;;  %v1429_v59 = vld [vmem:[%s1961_s5 + $0x30] ss:$8 sps:$4 sm:$0xff]   ;;  %v1434_v60 = vld [vmem:[%s1961_s5 + $0x24] ss:$8 sps:$4 sm:$0xff]  }
  0x15   :  { %v1432_v61 = vld [vmem:[%s1961_s5 + $0x20] ss:$8 sps:$4 sm:$0xff]   ;;  %v1437_v62 = vld [vmem:[%s1961_s5 + $0x14] ss:$8 sps:$4 sm:$0xff]   ;;  %v1435_v63 = vld [vmem:[%s1961_s5 + $0x10] ss:$8 sps:$4 sm:$0xff]  }
  0x16   :  { %423 = vmatpush1.bf16.msra.mxu1 %v1383_v26  ;;  %v1440_v0 = vld [vmem:[%s1961_s5 + $0x4] ss:$8 sps:$4 sm:$0xff]   ;;  %v1438_v1 = vld [vmem:[%s1961_s5] ss:$8 sps:$4 sm:$0xff]   ;;  %v1443_v2 = vld [vmem:[%s1961_s5 + $0xf4] ss:$8 sps:$4 sm:$0xff]  }
  0x17   :  { %172 = vmatpush1.bf16.msra.mxu0 %v1361_v17  ;;  %424 = vmatprep.subr.bf16.mxu1 %v1384_v27  ;;  %v1441_v3 = vld [vmem:[%s1961_s5 + $0xf0] ss:$8 sps:$4 sm:$0xff]   ;;  %v1446_v4 = vld [vmem:[%s1961_s5 + $0xe4] ss:$8 sps:$4 sm:$0xff]   ;;  %v1444_v5 = vld [vmem:[%s1961_s5 + $0xe0] ss:$8 sps:$4 sm:$0xff]  }
  0x18   :  { %173 = vmatprep.subr.bf16.mxu0 %v1362_v19  ;;  %v1449_v6 = vld [vmem:[%s1961_s5 + $0xd4] ss:$8 sps:$4 sm:$0xff]   ;;  %v1447_v7 = vld [vmem:[%s1961_s5 + $0xd0] ss:$8 sps:$4 sm:$0xff]   ;;  %v1452_v8 = vld [vmem:[%s1961_s5 + $0xc4] ss:$8 sps:$4 sm:$0xff]  }
  0x19   :  { %v1450_v9 = vld [vmem:[%s1961_s5 + $0xc0] ss:$8 sps:$4 sm:$0xff]   ;;  %v1455_v10 = vld [vmem:[%s1961_s5 + $0xb4] ss:$8 sps:$4 sm:$0xff]   ;;  %v1453_v11 = vld [vmem:[%s1961_s5 + $0xb0] ss:$8 sps:$4 sm:$0xff]  }
  0x1a   :  { %425 = vmatpush1.bf16.msra.mxu1 %v1386_v29  ;;  %v66_v13 = vshrl.u32 %v65_v12, 7  ;;  %v63_v16 = vld [vmem:[%s1962_s2] sm:$0x3] }
  0x1b   :  { %174 = vmatpush1.bf16.msra.mxu0 %v1364_v21  ;;  %426 = vmatprep.subr.bf16.mxu1 %v1387_v30  ;;  %v1484_v12 = vld [vmem:[%s1965_s9 + $0x20] sm:$0xff]  }
  0x1c   :  { %175 = vmatprep.subr.bf16.mxu0 %v1365_v23  ;;  %v1795_v14 = vsub.s32 1, %v66_v13  ;;  %v1797_v15 = vsub.s32 0, %v66_v13  ;;  %v495_v13 = vld [vmem:[%s1966_s6] sm:$0x3] }
  0x1e   :  { %427 = vmatpush1.bf16.msra.mxu1 %v1389_v31  ;;  %v72_v18 = vrot.slane %v63_v16, %v1795_v14  ;;  %v68_v19 = vrot.slane %v63_v16, %v1797_v15 }
  0x1f   :  { %176 = vmatpush1.bf16.msra.mxu0 %v1367_v25  ;;  %428 = vmatprep.subr.bf16.mxu1 %v1390_v32 }
  0x20   :  { %667 = vmatprep.subr.bf16.mxu0 %v1419_v51 }
  0x22   :  { %194 = vmatmul.mubr.bf16.vlgmr.msra.gmra.mxu0 %v1368_v28  ;;  %429 = vmatpush1.bf16.msra.mxu1 %v1392_v33  ;;  %v1458_v33 = vld [vmem:[%s1961_s5 + $0xa4] ss:$8 sps:$4 sm:$0xff]  }
  0x23   :  { %430 = vmatprep.subr.bf16.mxu1 %v1393_v34  ;;  %668 = vmatpush1.bf16.msra.mxu0 %v1417_v50  ;;  %v1456_v34 = vld [vmem:[%s1961_s5 + $0xa0] ss:$8 sps:$4 sm:$0xff]  }
  0x24   :  { %669 = vmatprep.subr.bf16.mxu0 %v1422_v52 }
  0x26   :  { %431 = vmatpush2.bf16.msra.mxu1 %v1395_v35  ;;  %v1461_v35 = vld [vmem:[%s1961_s5 + $0x94] ss:$8 sps:$4 sm:$0xff]  }
  0x27   :  { %432 = vmatprep.subr.bf16.mxu1 %v1396_v36  ;;  %670 = vmatpush1.bf16.msra.mxu0 %v1420_v53  ;;  %v1459_v36 = vld [vmem:[%s1961_s5 + $0x90] ss:$8 sps:$4 sm:$0xff]  }
  0x28   :  { %671 = vmatprep.subr.bf16.mxu0 %v1425_v54 }
  0x2a   :  { %433 = vmatpush2.bf16.msra.mxu1 %v1398_v37  ;;  %v1464_v37 = vld [vmem:[%s1961_s5 + $0x84] ss:$8 sps:$4 sm:$0xff]  }
  0x2b   :  { %434 = vmatprep.subr.bf16.mxu1 %v1399_v38  ;;  %672 = vmatpush1.bf16.msra.mxu0 %v1423_v55  ;;  %v1462_v38 = vld [vmem:[%s1961_s5 + $0x80] ss:$8 sps:$4 sm:$0xff]  }
  0x2c   :  { %673 = vmatprep.subr.bf16.mxu0 %v1428_v56 }
  0x2e   :  { %435 = vmatpush2.bf16.msra.mxu1 %v1401_v39  ;;  %v1465_v39 = vld [vmem:[%s1963_s7 + $0x78] sm:$0xff]  }
  0x2f   :  { %436 = vmatprep.subr.bf16.mxu1 %v1402_v40  ;;  %674 = vmatpush1.bf16.msra.mxu0 %v1426_v57  ;;  %v1466_v40 = vld [vmem:[%s1963_s7 + $0x38] sm:$0xff]  }
  0x30   :  { %675 = vmatprep.subr.bf16.mxu0 %v1431_v58 }
  0x32   :  { %437 = vmatpush2.bf16.msra.mxu1 %v1404_v41  ;;  %v1467_v41 = vld [vmem:[%s1963_s7 + $0x70] sm:$0xff]  }
  0x33   :  { %438 = vmatprep.subr.bf16.mxu1 %v1405_v42  ;;  %676 = vmatpush1.bf16.msra.mxu0 %v1429_v59  ;;  %v1468_v42 = vld [vmem:[%s1963_s7 + $0x30] sm:$0xff]  }
  0x34   :  { %677 = vmatprep.subr.bf16.mxu0 %v1434_v60 }
  0x36   :  { %439 = vmatpush2.bf16.msra.mxu1 %v1407_v43  ;;  %v1469_v43 = vld [vmem:[%s1963_s7 + $0x68] sm:$0xff]  }
  0x37   :  { %440 = vmatprep.subr.bf16.mxu1 %v1408_v44  ;;  %678 = vmatpush1.bf16.msra.mxu0 %v1432_v61  ;;  %v1470_v44 = vld [vmem:[%s1963_s7 + $0x28] sm:$0xff]  }
  0x38   :  { %679 = vmatprep.subr.bf16.mxu0 %v1437_v62 }
  0x3a   :  { %441 = vmatpush2.bf16.msra.mxu1 %v1410_v45  ;;  %v1471_v45 = vld [vmem:[%s1963_s7 + $0x60] sm:$0xff]  }
  0x3b   :  { %442 = vmatprep.subr.bf16.mxu1 %v1411_v46  ;;  %680 = vmatpush1.bf16.msra.mxu0 %v1435_v63  ;;  %v1472_v46 = vld [vmem:[%s1963_s7 + $0x20] sm:$0xff]  }
  0x3c   :  { %681 = vmatprep.subr.bf16.mxu0 %v1440_v0 }
  0x3e   :  { %443 = vmatpush2.bf16.msra.mxu1 %v1413_v47  ;;  %v1473_v47 = vld [vmem:[%s1963_s7 + $0x58] sm:$0xff]  }
  0x3f   :  { %444 = vmatprep.subr.bf16.mxu1 %v1414_v48  ;;  %682 = vmatpush1.bf16.msra.mxu0 %v1438_v1  ;;  %v1474_v48 = vld [vmem:[%s1963_s7 + $0x18] sm:$0xff]  }
  0x40   :  { %683 = vmatprep.subr.bf16.mxu0 %v1443_v2  ;;  %v1475_v2 = vld [vmem:[%s1963_s7 + $0x50] sm:$0xff]  }
  0x42   :  { %445 = vmatpush2.bf16.msra.mxu1 %v1416_v49  ;;  %v242_v49 = vld [vmem:[%s1964_s4] sm:$0x3] }
  0x43   :  { %684 = vmatpush2.bf16.msra.mxu0 %v1441_v3  ;;  %1261 = vmatprep.subr.bf16.mxu1 %v1465_v39  ;;  %v251_v51 = vrot.slane %v242_v49, %v1795_v14  ;;  %v247_v52 = vrot.slane %v242_v49, %v1797_v15  ;;  %v1476_v3 = vld [vmem:[%s1963_s7 + $0x10] sm:$0xff]  }
  0x44   :  { %685 = vmatprep.subr.bf16.mxu0 %v1446_v4  ;;  %v1477_v4 = vld [vmem:[%s1963_s7 + $0x48] sm:$0xff]  }
  0x47   :  { %686 = vmatpush2.bf16.msra.mxu0 %v1444_v5  ;;  %v1478_v5 = vld [vmem:[%s1963_s7 + $0x8] sm:$0xff]  }
  0x48   :  { %687 = vmatprep.subr.bf16.mxu0 %v1449_v6  ;;  %v1479_v6 = vld [vmem:[%s1963_s7 + $0x40] sm:$0xff]  }
  0x4b   :  { %688 = vmatpush2.bf16.msra.mxu0 %v1447_v7  ;;  %v1480_v7 = vld [vmem:[%s1963_s7] sm:$0xff]  }
  0x4c   :  { %689 = vmatprep.subr.bf16.mxu0 %v1452_v8  ;;  %v1498_v8 = vmov 0.0  }
  0x4f   :  { %690 = vmatpush2.bf16.msra.mxu0 %v1450_v9  ;;  %v1481_v9 = vld [vmem:[%s1965_s9 + $0x38] sm:$0xff]  }
  0x50   :  { %691 = vmatprep.subr.bf16.mxu0 %v1455_v10  ;;  %v1482_v10 = vld [vmem:[%s1965_s9 + $0x30] sm:$0xff]  }
  0x53   :  { %692 = vmatpush2.bf16.msra.mxu0 %v1453_v11  ;;  %v1483_v11 = vld [vmem:[%s1965_s9 + $0x28] sm:$0xff]  }
  0x54   :  { %693 = vmatprep.subr.bf16.mxu0 %v1458_v33  ;;  %v1488_v33 = vld [vmem:[%s1965_s9] sm:$0xff]  }
  0x57   :  { %694 = vmatpush2.bf16.msra.mxu0 %v1456_v34  ;;  %v1489_v34 = vld [vmem:[%s1967_s11 + $0x38] sm:$0xff]  }
  0x58   :  { %695 = vmatprep.subr.bf16.mxu0 %v1461_v35  ;;  %v1490_v35 = vld [vmem:[%s1967_s11 + $0x30] sm:$0xff]  }
  0x5b   :  { %696 = vmatpush2.bf16.msra.mxu0 %v1459_v36  ;;  %v1491_v36 = vld [vmem:[%s1967_s11 + $0x28] sm:$0xff]  }
  0x5c   :  { %697 = vmatprep.subr.bf16.mxu0 %v1464_v37  ;;  %v1492_v37 = vld [vmem:[%s1967_s11 + $0x20] sm:$0xff]  }
  0x5f   :  { %698 = vmatpush2.bf16.msra.mxu0 %v1462_v38  ;;  %v1493_v38 = vld [vmem:[%s1967_s11 + $0x18] sm:$0xff]  }
  0x60   :  { %1301 = vmatprep.subr.bf16.mxu0 %v1498_v8 }
  0xe2   :  { %v195_v17 = vpop.f32.mrf.mxu0 }
  0xe3   :  { %v196_v24 = vadd.f32 %v195_v17, %v68_v19  ;;  %v504_v17 = vrot.slane %v495_v13, %v1795_v14  ;;  %v1485_v14 = vld [vmem:[%s1965_s9 + $0x18] sm:$0xff]  }
  0xe4   :  { %v197_v20 = vpop.f32.mrf.mxu0 }
  0xe5   :  { %v198_v22 = vadd.f32 %v197_v20, %v72_v18  ;;  %v204_v30 = vmax.f32 %v196_v24, 0.0 }
  0xe6   :  { %v199_v21 = vpop.f32.mrf.mxu0 }
  0xe7   :  { %v200_v23 = vadd.f32 %v199_v21, %v68_v19  ;;  %v205_v28 = vmax.f32 %v198_v22, 0.0 }
  0xe8   :  { %v201_v25 = vpop.f32.mrf.mxu0 }
  0xe9   :  { %v202_v26 = vadd.f32 %v201_v25, %v72_v18  ;;  %v206_v27 = vmax.f32 %v200_v23, 0.0  ;;  %v500_v18 = vrot.slane %v495_v13, %v1797_v15  ;;  %v1486_v15 = vld [vmem:[%s1965_s9 + $0x10] sm:$0xff]  }
  0xeb   :  { %v207_v29 = vmax.f32 %v202_v26, 0.0  ;;  %v208_v32 = vpack.c.bf16 %v206_v27, %v204_v30 }
  0xed   :  { %v209_v31 = vpack.c.bf16 %v207_v29, %v205_v28 }
  0xef   :  { %446 = vmatprep.mubr.bf16.mxu1 %v209_v31 }
  0xf0   :  { %447 = vmatmul.mubr.bf16.vlgmr.msra.gmra.mxu1 %v208_v32  ;;  %v1487_v32 = vld [vmem:[%s1965_s9 + $0x8] sm:$0xff]  }
  0xf1   :  { %1262 = vmatpush3.bf16.msra.mxu1 %v1466_v40 }
  0xf2   :  { %1263 = vmatprep.subr.bf16.mxu1 %v1467_v41 }
  0xf5   :  { %1264 = vmatpush3.bf16.msra.mxu1 %v1468_v42  ;;  %v1217_v42 = vld [vmem:[%s1968_s8] ss:$0 sm:$0xff] }
  0xf6   :  { %1265 = vmatprep.subr.bf16.mxu1 %v1469_v43 }
  0xf9   :  { %1266 = vmatpush3.bf16.msra.mxu1 %v1470_v44 }
  0xfa   :  { %1267 = vmatprep.subr.bf16.mxu1 %v1471_v45 }
  0xfd   :  { %1268 = vmatpush3.bf16.msra.mxu1 %v1472_v46 }
  0xfe   :  { %1269 = vmatprep.subr.bf16.mxu1 %v1473_v47 }
 0x101   :  { %1270 = vmatpush3.bf16.msra.mxu1 %v1474_v48 }
 0x102   :  { %1271 = vmatprep.subr.bf16.mxu1 %v1475_v2 }
 0x105   :  { %1272 = vmatpush3.bf16.msra.mxu1 %v1476_v3 }
 0x106   :  { %1273 = vmatprep.subr.bf16.mxu1 %v1477_v4 }
 0x109   :  { %1274 = vmatpush3.bf16.msra.mxu1 %v1478_v5 }
 0x10a   :  { %1275 = vmatprep.subr.bf16.mxu1 %v1479_v6 }
 0x10d   :  { %1276 = vmatpush3.bf16.msra.mxu1 %v1480_v7 }
 0x10e   :  { %1321 = vmatprep.subr.bf16.mxu1 %v1498_v8 }
 0x1b0   :  { %v448_v50 = vpop.f32.mrf.mxu1 }
 0x1b1   :  { %v449_v57 = vadd.f32 %v448_v50, %v247_v52 }
 0x1b2   :  { %v450_v53 = vpop.f32.mrf.mxu1 }
 0x1b3   :  { %v451_v55 = vadd.f32 %v450_v53, %v251_v51  ;;  %v457_v63 = vmax.f32 %v449_v57, 0.0  ;;  %v1496_v53 = vld [vmem:[%s1967_s11] sm:$0xff]  }
 0x1b4   :  { %v452_v54 = vpop.f32.mrf.mxu1 }
 0x1b5   :  { %v453_v56 = vadd.f32 %v452_v54, %v247_v52  ;;  %v458_v61 = vmax.f32 %v451_v55, 0.0  ;;  %v1495_v52 = vld [vmem:[%s1967_s11 + $0x8] sm:$0xff]   ;;  %v1234_v54 = vld [vmem:[%s1969_s10] ss:$0 sm:$0xff] }
 0x1b6   :  { %v454_v58 = vpop.f32.mrf.mxu1 }
 0x1b7   :  { %v455_v59 = vadd.f32 %v454_v58, %v251_v51  ;;  %v459_v60 = vmax.f32 %v453_v56, 0.0  ;;  %v1494_v51 = vld [vmem:[%s1967_s11 + $0x10] sm:$0xff]  }
 0x1b9   :  { %v460_v62 = vmax.f32 %v455_v59, 0.0  ;;  %v461_v1 = vpack.c.bf16 %v459_v60, %v457_v63 }
 0x1bb   :  { %v462_v0 = vpack.c.bf16 %v460_v62, %v458_v61 }
 0x1bd   :  { %699 = vmatprep.mubr.bf16.mxu0 %v462_v0 }
 0x1be   :  { %700 = vmatmul.mubr.bf16.vlgmr.msra.gmra.mxu0 %v461_v1  ;;  %v1243_v1 = vld [vmem:[%s1970_s12] ss:$0 sm:$0xff] }
 0x1bf   :  { %1302 = vmatpush3.bf16.msra.mxu0 %v1481_v9  ;;  %1317 = vmatprep.mubr.msk.bf16.mxu0 %vm1499_vm0, %v1498_v8 }
 0x1c0   :  { %1303 = vmatprep.subr.bf16.mxu0 %v1498_v8 }
 0x1c3   :  { %1304 = vmatpush3.bf16.msra.mxu0 %v1482_v10 }
 0x1c4   :  { %1305 = vmatprep.subr.bf16.mxu0 %v1498_v8 }
 0x1c7   :  { %1306 = vmatpush3.bf16.msra.mxu0 %v1483_v11 }
 0x1c8   :  { %1307 = vmatprep.subr.bf16.mxu0 %v1498_v8 }
 0x1cb   :  { %1308 = vmatpush3.bf16.msra.mxu0 %v1484_v12 }
 0x1cc   :  { %1309 = vmatprep.subr.bf16.mxu0 %v1498_v8 }
 0x1cf   :  { %1310 = vmatpush3.bf16.msra.mxu0 %v1485_v14 }
 0x1d0   :  { %1311 = vmatprep.subr.bf16.mxu0 %v1498_v8 }
 0x1d3   :  { %1312 = vmatpush3.bf16.msra.mxu0 %v1486_v15 }
 0x1d4   :  { %1313 = vmatprep.subr.bf16.mxu0 %v1498_v8 }
 0x1d7   :  { %1314 = vmatpush3.bf16.msra.mxu0 %v1487_v32 }
 0x1d8   :  { %1315 = vmatprep.subr.bf16.mxu0 %v1498_v8 }
 0x1db   :  { %1316 = vmatpush3.bf16.msra.mxu0 %v1488_v33 }
 0x27e   :  { %v701_v16 = vpop.f32.mrf.mxu0 }
 0x27f   :  { %v702_v23 = vadd.f32 %v701_v16, %v500_v18 }
 0x280   :  { %v703_v19 = vpop.f32.mrf.mxu0 }
 0x281   :  { %v704_v21 = vadd.f32 %v703_v19, %v504_v17  ;;  %v710_v29 = vmax.f32 %v702_v23, 0.0 }
 0x282   :  { %v705_v20 = vpop.f32.mrf.mxu0 }
 0x283   :  { %v706_v22 = vadd.f32 %v705_v20, %v500_v18  ;;  %v711_v27 = vmax.f32 %v704_v21, 0.0 }
 0x284   :  { %v707_v24 = vpop.f32.mrf.mxu0 }
 0x285   :  { %v708_v25 = vadd.f32 %v707_v24, %v504_v17  ;;  %v712_v26 = vmax.f32 %v706_v22, 0.0 }
 0x287   :  { %v713_v28 = vmax.f32 %v708_v25, 0.0  ;;  %v714_v31 = vpack.c.bf16 %v712_v26, %v710_v29 }
 0x289   :  { %v715_v30 = vpack.c.bf16 %v713_v28, %v711_v27 }
 0x28b   :  { %883 = vmatprep.mubr.bf16.mxu1 %v715_v30 }
 0x28c   :  { %884 = vmatmul.mubr.bf16.vlgmr.msra.gmra.mxu1 %v714_v31 }
 0x28d   :  { %1337 = vmatprep.mubr.msk.bf16.mxu1 %vm1499_vm0, %v1498_v8  ;;  %1322 = vmatpush3.bf16.msra.mxu1 %v1489_v34 }
 0x28e   :  { %1323 = vmatprep.subr.bf16.mxu1 %v1498_v8 }
 0x291   :  { %1324 = vmatpush3.bf16.msra.mxu1 %v1490_v35 }
 0x292   :  { %1325 = vmatprep.subr.bf16.mxu1 %v1498_v8 }
 0x295   :  { %1326 = vmatpush3.bf16.msra.mxu1 %v1491_v36 }
 0x296   :  { %1327 = vmatprep.subr.bf16.mxu1 %v1498_v8 }
 0x299   :  { %1328 = vmatpush3.bf16.msra.mxu1 %v1492_v37 }
 0x29a   :  { %1329 = vmatprep.subr.bf16.mxu1 %v1498_v8 }
 0x29d   :  { %1330 = vmatpush3.bf16.msra.mxu1 %v1493_v38 }
 0x29e   :  { %1331 = vmatprep.subr.bf16.mxu1 %v1498_v8 }
 0x2a1   :  { %1332 = vmatpush3.bf16.msra.mxu1 %v1494_v51 }
 0x2a2   :  { %1333 = vmatprep.subr.bf16.mxu1 %v1498_v8 }
 0x2a5   :  { %1334 = vmatpush3.bf16.msra.mxu1 %v1495_v52 }
 0x2a6   :  { %1335 = vmatprep.subr.bf16.mxu1 %v1498_v8 }
 0x2a9   :  { %1336 = vmatpush3.bf16.msra.mxu1 %v1496_v53 }
 0x34c   :  { %v1277_v39 = vpop.f32.mrf.mxu1 }
 0x34e   :  { %v1278_v40 = vpop.f32.mrf.mxu1 }
 0x34f   :  { %v1279_v41 = vadd.f32 %v1278_v40, %v1277_v39 }
 0x350   :  { %v1280_v43 = vpop.f32.mrf.mxu1 }
 0x351   :  { %v886_v45 = vadd.f32 %v1279_v41, %v1217_v42 }
 0x352   :  { %v1281_v44 = vpop.f32.mrf.mxu1 }
 0x353   :  { %v1282_v46 = vadd.f32 %v1281_v44, %v1280_v43  ;;  %v892_v48 = vmax.f32 %v886_v45, 0.0 }
 0x355   :  { %v889_v47 = vadd.f32 %v1282_v46, %v1217_v42 }
 0x357   :  { %v893_v49 = vmax.f32 %v889_v47, 0.0 }
 0x359   :  { %v894_v50 = vpack.c.bf16 %v893_v49, %v892_v48 }
 0x35b   :  { %1318 = vmatmul.mubr.bf16.vlgmr.msra.gmra.mxu0 %v894_v50 }
 0x41b   :  { %v1000_v55 = vpop.f32.mrf.mxu0 }
 0x41c   :  { %v1001_v57 = vadd.f32 %v1234_v54, %v1000_v55 }
 0x41d   :  { %v1319_v56 = vpop.f32.mrf.mxu0 }
 0x41e   :  { %v1007_v61 = vmax.f32 %v1001_v57, 0.0 }
 0x41f   :  { %v1003_v58 = vpop.f32.mrf.mxu0 }
 0x420   :  { %v1004_v59 = vadd.f32 %v1234_v54, %v1003_v58 }
 0x421   :  { %v1320_v60 = vpop.f32.mrf.mxu0 }
 0x422   :  { %v1008_v62 = vmax.f32 %v1004_v59, 0.0 }
 0x424   :  { %v1009_v63 = vpack.c.bf16 %v1008_v62, %v1007_v61 }
 0x426   :  { %1338 = vmatmul.mubr.bf16.vlgmr.msra.gmra.mxu1 %v1009_v63 }
 0x4e6   :  { %v1115_v0 = vpop.f32.mrf.mxu1 }
 0x4e7   :  { %v1116_v4 = vadd.f32 %v1243_v1, %v1115_v0 }
 0x4e8   :  { %v1339_v2 = vpop.f32.mrf.mxu1 }
 0x4ea   :  { %v1118_v3 = vpop.f32.mrf.mxu1 }
 0x4eb   :  { %v1119_v5 = vadd.f32 %v1243_v1, %v1118_v3 }
 0x4ec   :  { %v1340_v6 = vpop.f32.mrf.mxu1 }
 0x4ed   :  { %v1259_v7 = vpack.c.bf16 %v1119_v5, %v1116_v4 }
 0x4ef   :  { %1260 = vst [vmem:[%s1971_s13] sm:$0xff] %v1259_v7  }

</bundles_post_ra>
